<compile_context>
chip_gen: v6e
topology: v6e:2x2x1
jax: 0.10.0
libtpu: 0.0.40
codegen_flags: <defaults>
</compile_context>

<pallas_src>
import functools

import jax
import jax.numpy as jnp
from jax import lax
from jax.experimental import pallas as pl
from jax.experimental.pallas import tpu as pltpu


def _round_up(x: int, m: int) -> int:
    return ((x + m - 1) // m) * m


def _cdiv(a: int, b: int) -> int:
    return -(-a // b)


def _modified_huber_kernel(y_pred_ref, y_true_ref, o_ref, acc_ref, *,
                           delta, factor, inv_n, n_features, block_n,
                           mask_needed):
    j = pl.program_id(1)  # feature (reduction) axis -- last grid axis

    @pl.when(j == 0)
    def _():
        acc_ref[...] = jnp.zeros_like(acc_ref)

    # Elementwise hot path, f32 accumulation (VPU work; hidden under DMA).
    err = y_true_ref[...].astype(jnp.float32) - y_pred_ref[...].astype(jnp.float32)
    abs_err = jnp.abs(err)
    quadratic = jnp.minimum(abs_err, jnp.float32(delta))
    linear = abs_err - quadratic
    loss = 0.5 * quadratic * quadratic + jnp.float32(delta) * linear
    scaled = loss * (1.0 + jnp.float32(factor) * abs_err)

    if mask_needed:
        # Static check: only emitted when N is not a multiple of TN.  The last
        # feature tile has out-of-bounds (garbage) lanes; zero them before the
        # reduction so they cannot corrupt valid rows.  `valid` >= block_n on
        # every tile except the last, so the mask is a no-op elsewhere.
        valid = n_features - j * block_n
        col = lax.broadcasted_iota(jnp.int32, scaled.shape, 1)
        scaled = jnp.where(col < valid, scaled, jnp.float32(0.0))

    # Fold the TN columns into 128 lane-wide partial sums with vreg-aligned
    # slices (pure VPU adds); the cross-lane reduce is deferred to finalize.
    partial = scaled[:, 0:128]
    for c in range(1, block_n // 128):
        partial = partial + scaled[:, c * 128:(c + 1) * 128]
    acc_ref[...] += partial

    @pl.when(j == pl.num_programs(1) - 1)
    def _():
        # Single cross-lane reduce + division by the *true* feature count.
        row = jnp.sum(acc_ref[...], axis=1, keepdims=True)
        o_ref[...] = (row * jnp.float32(inv_n)).astype(o_ref.dtype)


def modified_huber_loss(y_pred, y_true, *, delta: float = 1.0,
                        factor: float = 1.5, tb: int = 512, tn: int = 2048):
    """Pallas equivalent of LossFunctionModifiedHuber(delta, factor).forward."""
    assert y_pred.shape == y_true.shape and y_pred.ndim == 2
    B, N = y_pred.shape
    itemsize = jnp.dtype(y_pred.dtype).itemsize

    # Vreg-aligned tile sizes clamped to the problem size (no host padding).
    TB = min(_round_up(tb, 8), _round_up(B, 8))
    TN = min(_round_up(tn, 128), _round_up(N, 128))

    # v7x megacore: make sure the "parallel" batch axis has >= 2 tiles so both
    # TensorCores get work (harmless on single-TC v5e/v6e).
    if _cdiv(B, TB) < 2 and B > 8:
        TB = _round_up(_cdiv(B, 2), 8)

    grid = (_cdiv(B, TB), _cdiv(N, TN))
    mask_needed = (N % TN) != 0

    out = pl.pallas_call(
        functools.partial(_modified_huber_kernel,
                          delta=float(delta), factor=float(factor),
                          inv_n=1.0 / float(N), n_features=N, block_n=TN,
                          mask_needed=mask_needed),
        out_shape=jax.ShapeDtypeStruct((B, 1), y_pred.dtype),
        grid_spec=pltpu.PrefetchScalarGridSpec(
            num_scalar_prefetch=0,
            grid=grid,
            in_specs=[
                pl.BlockSpec((TB, TN), lambda i, j: (i, j)),
                pl.BlockSpec((TB, TN), lambda i, j: (i, j)),
            ],
            # Same output block across the reduction axis -> resident tile.
            out_specs=pl.BlockSpec((TB, 1), lambda i, j: (i, 0)),
            scratch_shapes=[pltpu.VMEM((TB, 128), jnp.float32)],
        ),
        compiler_params=pltpu.CompilerParams(
            dimension_semantics=("parallel", "arbitrary"),
            vmem_limit_bytes=32 * 1024 * 1024,
        ),
        cost_estimate=pl.CostEstimate(
            flops=11 * B * N,
            transcendentals=0,
            bytes_accessed=2 * B * N * itemsize + B * itemsize,
        ),
    )(y_pred, y_true)

    return out[:, 0]


def _reference(y_pred, y_true, delta, factor):
    err = y_true - y_pred
    abs_err = jnp.abs(err)
    quad = jnp.minimum(abs_err, delta)
    lin = abs_err - quad
    loss = 0.5 * quad ** 2 + delta * lin
    return jnp.mean(loss * (1 + factor * abs_err), axis=1)


if __name__ == "__main__":
    # LossFunctionModifiedHuber has no learnable parameters; delta/factor are
    # plain Python floats matching the module defaults.
    delta, factor = 1.0, 1.5

    key = jax.random.PRNGKey(0)
    k1, k2 = jax.random.split(key)

    # 1) Small demo shape matching the module's 2-D (batch, features) input.
    batch, features = 4, 32
    y_pred = jax.random.normal(k1, (batch, features), dtype=jnp.float32) * 2.0
    y_true = jax.random.normal(k2, (batch, features), dtype=jnp.float32) * 2.0

    out = modified_huber_loss(y_pred, y_true, delta=delta, factor=factor)
    out = jax.block_until_ready(out)
    ref = _reference(y_pred, y_true, delta, factor)
    assert out.shape == (batch,)
    assert jnp.allclose(out, ref, rtol=1e-5, atol=1e-5), (out, ref)

    # 2) Multi-tile path with batch AND feature remainders (exercises the
    #    in-kernel remainder masking, the feature-axis accumulator, and the
    #    clipped output writeback -- no host-side padding anywhere).
    k3, k4 = jax.random.split(k2)
    B2, N2 = 200, 700
    yp2 = jax.random.normal(k3, (B2, N2), dtype=jnp.float32) * 1.5
    yt2 = jax.random.normal(k4, (B2, N2), dtype=jnp.float32) * 1.5
    out2 = modified_huber_loss(yp2, yt2, delta=delta, factor=factor, tb=64, tn=256)
    out2 = jax.block_until_ready(out2)
    ref2 = _reference(yp2, yt2, delta, factor)
    assert out2.shape == (B2,)
    assert jnp.allclose(out2, ref2, rtol=1e-5, atol=1e-5)

    print("KERNEL_OK")
</pallas_src>

<mosaic_0001>
module attributes {stable_mosaic.version = 11 : i64} {
  func.func @_modified_huber_kernel(%arg0: i32, %arg1: i32, %arg2: memref<8x128xf32, #tpu.memory_space<vmem>>, %arg3: memref<8x128xf32, #tpu.memory_space<vmem>>, %arg4: memref<8x1xf32, #tpu.memory_space<vmem>>, %arg5: memref<8x128xf32, #tpu.memory_space<vmem>>) attributes {dimension_semantics = [#tpu.dimension_semantics<parallel>, #tpu.dimension_semantics<arbitrary>], iteration_bounds = array<i64: 1, 1>, scalar_prefetch = 0 : i64, scratch_operands = 1 : i64, tpu.core_type = #tpu.core_type<tc>, window_params = [{transform_indices = @transform_0, window_bounds = array<i64: 8, 128>}, {transform_indices = @transform_1, window_bounds = array<i64: 8, 128>}, {transform_indices = @transform_2, window_bounds = array<i64: 8, 1>}]} {
    %c0_i32 = arith.constant 0 : i32
    %0 = arith.cmpi eq, %arg1, %c0_i32 : i32
    %1 = arith.extui %0 : i1 to i32
    %c0_i32_0 = arith.constant 0 : i32
    %2 = arith.cmpi ne, %1, %c0_i32_0 : i32
    scf.if %2 {
      %cst_15 = arith.constant 0.000000e+00 : f32
      %34 = vector.broadcast %cst_15 : f32 to vector<8x128xf32>
      %c0_16 = arith.constant 0 : index
      %c0_17 = arith.constant 0 : index
      %35 = vector.load %arg5[%c0_16, %c0_17] : memref<8x128xf32, #tpu.memory_space<vmem>>, vector<8x128xf32>
      tpu.vector_store %arg5[%c0_16, %c0_17], %34 {strides = array<i32>} : memref<8x128xf32, #tpu.memory_space<vmem>>, vector<8x128xf32>,
    } else {
    }
    %c0 = arith.constant 0 : index
    %c0_1 = arith.constant 0 : index
    %3 = vector.load %arg3[%c0, %c0_1] : memref<8x128xf32, #tpu.memory_space<vmem>>, vector<8x128xf32>
    %c0_2 = arith.constant 0 : index
    %c0_3 = arith.constant 0 : index
    %4 = vector.load %arg2[%c0_2, %c0_3] : memref<8x128xf32, #tpu.memory_space<vmem>>, vector<8x128xf32>
    %5 = arith.subf %3, %4 : vector<8x128xf32>
    %6 = math.absf %5 : vector<8x128xf32>
    %cst = arith.constant 1.000000e+00 : f32
    %7 = vector.broadcast %cst : f32 to vector<8x128xf32>
    %8 = arith.minimumf %6, %7 : vector<8x128xf32>
    %9 = arith.subf %6, %8 : vector<8x128xf32>
    %cst_4 = arith.constant 5.000000e-01 : f32
    %10 = vector.broadcast %cst_4 : f32 to vector<8x128xf32>
    %11 = arith.mulf %10, %8 : vector<8x128xf32>
    %12 = arith.mulf %11, %8 : vector<8x128xf32>
    %cst_5 = arith.constant 1.000000e+00 : f32
    %13 = vector.broadcast %cst_5 : f32 to vector<8x128xf32>
    %14 = arith.mulf %13, %9 : vector<8x128xf32>
    %15 = arith.addf %12, %14 : vector<8x128xf32>
    %cst_6 = arith.constant 1.500000e+00 : f32
    %16 = vector.broadcast %cst_6 : f32 to vector<8x128xf32>
    %17 = arith.mulf %16, %6 : vector<8x128xf32>
    %cst_7 = arith.constant 1.000000e+00 : f32
    %18 = vector.broadcast %cst_7 : f32 to vector<8x128xf32>
    %19 = arith.addf %18, %17 : vector<8x128xf32>
    %20 = arith.mulf %15, %19 : vector<8x128xf32>
    %c128_i32 = arith.constant 128 : i32
    %21 = arith.muli %arg1, %c128_i32 : i32
    %c32_i32 = arith.constant 32 : i32
    %22 = arith.subi %c32_i32, %21 : i32
    %23 = tpu.iota {dimensions = array<i32: 1>} : vector<8x128xi32>
    %24 = vector.broadcast %22 : i32 to vector<8x128xi32>
    %25 = arith.cmpi slt, %23, %24 : vector<8x128xi32>
    %cst_8 = arith.constant 0.000000e+00 : f32
    %26 = vector.broadcast %cst_8 : f32 to vector<8x128xf32>
    %27 = arith.select %25, %20, %26 : vector<8x128xi1>, vector<8x128xf32>
    %c0_9 = arith.constant 0 : index
    %c0_10 = arith.constant 0 : index
    %28 = vector.load %arg5[%c0_9, %c0_10] : memref<8x128xf32, #tpu.memory_space<vmem>>, vector<8x128xf32>
    %29 = arith.addf %28, %27 : vector<8x128xf32>
    %c0_11 = arith.constant 0 : index
    %c0_12 = arith.constant 0 : index
    %30 = vector.load %arg5[%c0_11, %c0_12] : memref<8x128xf32, #tpu.memory_space<vmem>>, vector<8x128xf32>
    tpu.vector_store %arg5[%c0_11, %c0_12], %29 {strides = array<i32>} : memref<8x128xf32, #tpu.memory_space<vmem>>, vector<8x128xf32>,
    %c0_i32_13 = arith.constant 0 : i32
    %31 = arith.cmpi eq, %arg1, %c0_i32_13 : i32
    %32 = arith.extui %31 : i1 to i32
    %c0_i32_14 = arith.constant 0 : i32
    %33 = arith.cmpi ne, %32, %c0_i32_14 : i32
    scf.if %33 {
      %c0_15 = arith.constant 0 : index
      %c0_16 = arith.constant 0 : index
      %34 = vector.load %arg5[%c0_15, %c0_16] : memref<8x128xf32, #tpu.memory_space<vmem>>, vector<8x128xf32>
      %cst_17 = arith.constant dense<0.000000e+00> : vector<8xf32>
      %35 = vector.multi_reduction <add>, %34, %cst_17 [1] : vector<8x128xf32> to vector<8xf32>
      %36 = vector.shape_cast %35 : vector<8xf32> to vector<8x1xf32>
      %cst_18 = arith.constant 3.125000e-02 : f32
      %37 = vector.broadcast %cst_18 : f32 to vector<8x1xf32>
      %38 = arith.mulf %36, %37 : vector<8x1xf32>
      %c0_19 = arith.constant 0 : index
      %c0_20 = arith.constant 0 : index
      %39 = vector.load %arg4[%c0_19, %c0_20] : memref<8x1xf32, #tpu.memory_space<vmem>>, vector<8x1xf32>
      tpu.vector_store %arg4[%c0_19, %c0_20], %38 {strides = array<i32>} : memref<8x1xf32, #tpu.memory_space<vmem>>, vector<8x1xf32>,
    } else {
    }
    return
  }
  func.func @transform_0(%arg0: i32, %arg1: i32) -> (i32, i32) {
    %c0_i32 = arith.constant 0 : i32
    return %arg0, %arg1 : i32, i32
  }
  func.func @transform_1(%arg0: i32, %arg1: i32) -> (i32, i32) {
    %c0_i32 = arith.constant 0 : i32
    return %arg0, %arg1 : i32, i32
  }
  func.func @transform_2(%arg0: i32, %arg1: i32) -> (i32, i32) {
    %c0_i32 = arith.constant 0 : i32
    %c0_i32_0 = arith.constant 0 : i32
    return %arg0, %c0_i32 : i32, i32
  }
}

</mosaic_0001>

<bundles_post_ra>
// kernel: tpu_custom_call.1
= control target key start
LH: loop header
LB: loop body
LE: loop exit
PB: predicated region body
PF: predicated region fallthrough
CT: control target
= control target key end

     0   :  { %7 = vsyncpa [#allocation4], 0  ;;  %s194_s0 = inlined_call_operand.hbm [shape: f32[4,32], index: 0, kind: input, shape index: {}]   ;;  %s195_s1 = inlined_call_operand.hbm [shape: f32[4,32], index: 1, kind: input, shape index: {}]   ;;  %s196_s2 = inlined_call_operand.vmem [shape: f32[4,1], index: 2, kind: output, shape index: {}]  }
   0x1   :  { %8 = vsyncpa [#allocation6], 0 }
   0x2   :  { %13 = vsyncadd [#allocation4], 64  ;;  %s166_s9 = smov [#allocation3]  }
   0x3   :  { %s14_s10 = sshll.u32 %s166_s9, 4  ;;  %s15_s10 = int_to_ptr.vmem [resolvable:$true] %s14_s10 }
   0x4   :  { %s130_s11 = scalar_lea.vmem %s15_s10, 64  ;;  %s134_s12 = scalar_lea.vmem %s15_s10, 128 }
   0x5   :  { %p131_p0 = scmp.ne.s32.totalorder %s15_s10, %s130_s11  ;;  %p135_p1 = scmp.lt.s32.totalorder %s15_s10, %s15_s10 }
   0x6   :  { %p136_p2 = scmp.lt.s32.totalorder %s134_s12, %s130_s11 }
   0x8   :  { %p137_p3 = por %p136_p2, %p135_p1 }
   0xa   :  { %p138_p4 = pnand %p137_p3, %p131_p0 }
   0xc   :  { %141 = shalt.err (!%p138_p4)
}
   0xd   :  { %s167_s13 = smov 64   ;;  %s168_s14 = smov 4  }
   0xe   :  { %20 = dma.hbm_to_vmem [thread:$0]  %s194_s0, 64, %s15_s10, [#allocation4], %s167_s13, %s167_s13, %s168_s14  }
   0xf   :  { %25 = vsyncadd [#allocation6], 64  ;;  %s169_s17 = smov [#allocation5]  }
  0x10   :  { %s26_s18 = sshll.u32 %s169_s17, 4  ;;  %s27_s18 = int_to_ptr.vmem [resolvable:$true] %s26_s18 }
  0x11   :  { %s150_s19 = scalar_lea.vmem %s27_s18, 64  ;;  %s154_s20 = scalar_lea.vmem %s27_s18, 128 }
  0x12   :  { %p151_p5 = scmp.ne.s32.totalorder %s27_s18, %s150_s19  ;;  %p155_p6 = scmp.lt.s32.totalorder %s27_s18, %s27_s18 }
  0x13   :  { %p156_p7 = scmp.lt.s32.totalorder %s154_s20, %s150_s19 }
  0x15   :  { %p157_p8 = por %p156_p7, %p155_p6 }
  0x17   :  { %p158_p9 = pnand %p157_p8, %p151_p5 }
  0x19   :  { %161 = shalt.err (!%p158_p9)
}
  0x1a   :  { %32 = dma.hbm_to_vmem [thread:$0]  %s195_s1, 64, %s27_s18, [#allocation6], %s167_s13, %s167_s13, %s168_s14  }
  0x1b   :  { %162 = dma.done.wait [#allocation4], 128  }
  0x1c   :  { %163 = vsyncadd [#allocation4], 4294967168 }
  0x1d   :  { %164 = dma.done.wait [#allocation6], 128  }
  0x1e   :  { %165 = vsyncadd [#allocation6], 4294967168  ;;  %v44_v0 = vld [vmem:[#allocation5] sm:$0xff]  ;;  %v45_v1 = vld [vmem:[#allocation3] sm:$0xff]  ;;  %v58_v4 = vlaneseq  ;;  %vm73_vm1 = vcmask 7168  }
  0x1f   :  { %v46_v2 = vsub.f32 %v44_v0, %v45_v1 }
  0x20   :  { %v59_v9 = vand.u32 127, %v58_v4 }
  0x21   :  { %v47_v3 = vand.u32 2147483647, %v46_v2 }
  0x22   :  { %vm61_vm0 = vcmp.lt.s32.totalorder %v59_v9, 32 }
  0x23   :  { %v48_v5 = vmin.f32 %v47_v3, 1.0  ;;  %v53_v6 = vmul.f32 1.5, %v47_v3 }
  0x25   :  { %v49_v7 = vsub.f32 %v47_v3, %v48_v5  ;;  %v50_v8 = vmul.f32 0.5, %v48_v5  ;;  %v54_v11 = vadd.f32 1.0, %v53_v6 }
  0x27   :  { %v51_v10 = vmul.f32 %v50_v8, %v48_v5 }
  0x29   :  { %v52_v12 = vadd.f32 %v51_v10, %v49_v7 }
  0x2b   :  { %v55_v13 = vmul.f32 %v54_v11, %v52_v12 }
  0x2d   :  { %v62_v14 = vsel %vm61_vm0, %v55_v13, 0.0 }
  0x2e   :  { %70 = vadd.xlane.f32.xlu0 %v62_v14 }
  0xb7   :  { %v71_v15 = vpop.xlane.xlu0 %70 }
  0xb8   :  { %v72_v16 = vmul.f32 0.03125, %v71_v15 }
  0xba   :  { %74 = vst.msk [vmem:[#allocation7] sm:$0xff] %vm73_vm1, %v72_v16 }
  0xc1   :  { %v93_v17 = vld [vmem:[#allocation7] sm:$0xf] }
  0xc2   :  { %94 = vst [vmem:[%s196_s2] sm:$0xf] %v93_v17 }
  0xc3   :  { %112 = vsyncpa [#allocation4], 1 }
  0xc4   :  { %113 = vsyncpa [#allocation6], 1 }

</bundles_post_ra>
